<compile_context>
chip_gen: v5e
topology: v5e:2x2
jax: 0.10.0
libtpu: 0.0.40
codegen_flags: <defaults>
</compile_context>

<pallas_src>
import functools
import math

import jax
import jax.numpy as jnp
from jax import lax
from jax.experimental import pallas as pl
from jax.experimental.pallas import tpu as pltpu


def _encoder_layer_kernel(
    xq_ref, xf_ref,
    ln1g_ref, ln1b_ref,
    wq_ref, bq_ref, wk_ref, bk_ref, wv_ref, bv_ref, wo_ref, bo_ref,
    ln2g_ref, ln2b_ref,
    w1_ref, b1_ref, w2_ref, b2_ref,
    o_ref,
    *, num_heads: int,
):
    f32 = jnp.float32
    bf16 = jnp.bfloat16

    xq = xq_ref[0].astype(f32)          # (Lq, D) query rows for this grid step
    xf = xf_ref[0].astype(f32)          # (L , D) full sequence (K/V source)
    lq, d_model = xq.shape
    dk = d_model // num_heads
    scale = 1.0 / math.sqrt(dk)

    # ---- hoisted parameter reads (JAX does not CSE broadcast_in_dim) ----
    ln1_g = ln1g_ref[...]; ln1_b = ln1b_ref[...]
    ln2_g = ln2g_ref[...]; ln2_b = ln2b_ref[...]
    bq = bq_ref[...]; bk = bk_ref[...]; bv = bv_ref[...]
    bo = bo_ref[...]; b1 = b1_ref[...]; b2 = b2_ref[...]
    wo = wo_ref[...]                    # bf16; dk-row slices taken per head

    def layernorm(v, g, b, eps=1e-6):
        # Reference semantics: unbiased std (ddof=1), divide by (std + eps).
        mean = jnp.mean(v, axis=-1, keepdims=True)
        var = jnp.sum((v - mean) ** 2, axis=-1, keepdims=True) / (v.shape[-1] - 1)
        inv = pl.reciprocal(jnp.sqrt(var) + eps, approx=True)   # EUP slot
        return g * (v - mean) * inv + b

    # ---- sublayer 0: pre-norm multi-head self-attention + residual ----
    xq_n = layernorm(xq, ln1_g, ln1_b).astype(bf16)
    xf_n = layernorm(xf, ln1_g, ln1_b).astype(bf16)

    # bf16 MXU matmuls, f32 accumulation; bias adds in f32.
    q = jnp.dot(xq_n, wq_ref[...], preferred_element_type=f32) + bq   # (Lq, D)
    k = jnp.dot(xf_n, wk_ref[...], preferred_element_type=f32) + bk   # (L , D)
    v = jnp.dot(xf_n, wv_ref[...], preferred_element_type=f32) + bv   # (L , D)
    qb, kb, vb = q.astype(bf16), k.astype(bf16), v.astype(bf16)

    # Per-head attention accumulated straight into the output projection:
    # no concatenate along lanes, no explicit k.T (dot_general contracts the
    # last dims of q and k directly).
    # TODO(synk): on v7x/v6e, fuse pairs/quads of heads per matmul when dk < 128.
    attn_acc = jnp.zeros((lq, d_model), f32)
    for h in range(num_heads):          # small static H, unrolled
        sl = slice(h * dk, (h + 1) * dk)
        s = lax.dot_general(
            qb[:, sl], kb[:, sl],
            dimension_numbers=(((1,), (1,)), ((), ())),
            preferred_element_type=f32,
        ) * scale                                                  # (Lq, L)
        s = s - jnp.max(s, axis=-1, keepdims=True)
        p = jnp.exp(s)
        p = p * pl.reciprocal(jnp.sum(p, axis=-1, keepdims=True), approx=True)
        ctx = jnp.dot(p.astype(bf16), vb[:, sl], preferred_element_type=f32)
        attn_acc = attn_acc + jnp.dot(
            ctx.astype(bf16), wo[sl, :], preferred_element_type=f32)

    # TODO(synk): attention mask not applied (module forward defaults mask=None).
    x1 = xq + attn_acc + bo             # residual (dropout == identity in eval)

    # ---- sublayer 1: pre-norm position-wise feed-forward + residual ----
    xn2 = layernorm(x1, ln2_g, ln2_b).astype(bf16)
    h1 = jnp.maximum(jnp.dot(xn2, w1_ref[...], preferred_element_type=f32) + b1, 0.0)
    ff = jnp.dot(h1.astype(bf16), w2_ref[...], preferred_element_type=f32) + b2
    # TODO(synk): for very large d_ff on v7x (64 MiB VMEM), chunk the d_ff axis
    # with an f32 accumulator instead of materializing the full (Lq, d_ff) h1.

    o_ref[0] = (x1 + ff).astype(o_ref.dtype)


def _pick_block_l(L):
    """Query-tile length: multiple of 8, at most 512, dividing L."""
    if L <= 512:
        return L
    for cand in (512, 256, 128, 64, 32, 16, 8):
        if L % cand == 0:
            return cand
    return L


def encoder_layer(x, params, *, num_heads):
    """x: [B, L, D] float32.  params: dict of f32 weights (see init_params)."""
    B, L, D = x.shape
    d_ff = params["w1"].shape[1]
    assert D % num_heads == 0

    block_l = _pick_block_l(L)
    n_l = L // block_l

    # Weights feed the MXU -> keep them bf16 in VMEM (also halves DMA bytes).
    # Biases / LayerNorm params stay f32 (added after f32 accumulation).
    bf16 = jnp.bfloat16
    w = {k: params[k].astype(bf16) for k in ("wq", "wk", "wv", "wo", "w1", "w2")}

    const = lambda shape: pl.BlockSpec(shape, lambda b, t: (0, 0))
    in_specs = [
        pl.BlockSpec((1, block_l, D), lambda b, t: (b, t, 0)),  # x: query tile
        pl.BlockSpec((1, L, D), lambda b, t: (b, 0, 0)),        # x: full seq (K/V)
        const((1, D)), const((1, D)),                           # ln1 gamma/beta
        const((D, D)), const((1, D)),                           # wq, bq
        const((D, D)), const((1, D)),                           # wk, bk
        const((D, D)), const((1, D)),                           # wv, bv
        const((D, D)), const((1, D)),                           # wo, bo
        const((1, D)), const((1, D)),                           # ln2 gamma/beta
        const((D, d_ff)), const((1, d_ff)),                     # w1, b1
        const((d_ff, D)), const((1, D)),                        # w2, b2
    ]

    # Rough VMEM budget: double-buffered activation blocks + bf16 weights +
    # in-kernel intermediates; capped at 64 MiB so it is valid on v7x.
    est = (
        2 * (2 * block_l * D + L * D) * 4
        + 2 * ((4 * D * D + 2 * D * d_ff) * 2 + (6 * D + d_ff) * 4)
        + (block_l * L + block_l * d_ff + 3 * L * D + 6 * block_l * D) * 4
    )
    vmem_limit = int(min(64 * 1024 * 1024, max(32 * 1024 * 1024, 2 * est)))
    # TODO(synk): on v7x with production sizes, also single-buffer the weight
    # specs (pipeline_mode=pl.Buffered(1)) once the weights reach tens of MiB.

    kernel = functools.partial(_encoder_layer_kernel, num_heads=num_heads)
    return pl.pallas_call(
        kernel,
        out_shape=jax.ShapeDtypeStruct((B, L, D), x.dtype),
        grid_spec=pltpu.PrefetchScalarGridSpec(
            num_scalar_prefetch=0,
            grid=(B, n_l),
            in_specs=in_specs,
            out_specs=pl.BlockSpec((1, block_l, D), lambda b, t: (b, t, 0)),
        ),
        compiler_params=pltpu.CompilerParams(
            dimension_semantics=("parallel", "parallel"),
            vmem_limit_bytes=vmem_limit,
        ),
    )(
        x, x,
        params["ln1_g"], params["ln1_b"],
        w["wq"], params["bq"], w["wk"], params["bk"],
        w["wv"], params["bv"], w["wo"], params["bo"],
        params["ln2_g"], params["ln2_b"],
        w["w1"], params["b1"], w["w2"], params["b2"],
    )


def encoder_layer_ref(x, params, *, num_heads):
    """Pure-JAX f32 reference (module semantics) for validation."""
    B, L, D = x.shape
    dk = D // num_heads

    def ln(v, g, b, eps=1e-6):
        mean = jnp.mean(v, axis=-1, keepdims=True)
        var = jnp.sum((v - mean) ** 2, axis=-1, keepdims=True) / (D - 1)
        return g * (v - mean) / (jnp.sqrt(var) + eps) + b

    xn = ln(x, params["ln1_g"], params["ln1_b"])
    q = xn @ params["wq"] + params["bq"]
    k = xn @ params["wk"] + params["bk"]
    v = xn @ params["wv"] + params["bv"]
    qh = q.reshape(B, L, num_heads, dk).transpose(0, 2, 1, 3)
    kh = k.reshape(B, L, num_heads, dk).transpose(0, 2, 1, 3)
    vh = v.reshape(B, L, num_heads, dk).transpose(0, 2, 1, 3)
    s = jnp.einsum("bhqd,bhkd->bhqk", qh, kh) / math.sqrt(dk)
    p = jax.nn.softmax(s, axis=-1)
    o = jnp.einsum("bhqk,bhkd->bhqd", p, vh).transpose(0, 2, 1, 3).reshape(B, L, D)
    attn = o @ params["wo"] + params["bo"]
    x1 = x + attn
    xn2 = ln(x1, params["ln2_g"], params["ln2_b"])
    ff = jnp.maximum(xn2 @ params["w1"] + params["b1"], 0.0) @ params["w2"] + params["b2"]
    return x1 + ff


def init_params(key, d_model, d_ff):
    ks = jax.random.split(key, 8)
    s = 1.0 / math.sqrt(d_model)
    sf = 1.0 / math.sqrt(d_ff)
    return {
        "ln1_g": jnp.ones((1, d_model), jnp.float32),
        "ln1_b": jnp.zeros((1, d_model), jnp.float32),
        "wq": jax.random.normal(ks[0], (d_model, d_model), jnp.float32) * s,
        "bq": jnp.zeros((1, d_model), jnp.float32),
        "wk": jax.random.normal(ks[1], (d_model, d_model), jnp.float32) * s,
        "bk": jnp.zeros((1, d_model), jnp.float32),
        "wv": jax.random.normal(ks[2], (d_model, d_model), jnp.float32) * s,
        "bv": jnp.zeros((1, d_model), jnp.float32),
        "wo": jax.random.normal(ks[3], (d_model, d_model), jnp.float32) * s,
        "bo": jnp.zeros((1, d_model), jnp.float32),
        "ln2_g": jnp.ones((1, d_model), jnp.float32),
        "ln2_b": jnp.zeros((1, d_model), jnp.float32),
        "w1": jax.random.normal(ks[4], (d_model, d_ff), jnp.float32) * s,
        "b1": jnp.zeros((1, d_ff), jnp.float32),
        "w2": jax.random.normal(ks[5], (d_ff, d_model), jnp.float32) * sf,
        "b2": jnp.zeros((1, d_model), jnp.float32),
    }


if __name__ == "__main__":
    B, L, D, H, D_FF = 2, 8, 32, 4, 64

    key = jax.random.PRNGKey(0)
    kx, kp = jax.random.split(key)
    x = jax.random.normal(kx, (B, L, D), jnp.float32)
    params = init_params(kp, D, D_FF)

    out = encoder_layer(x, params, num_heads=H)
    out = jax.block_until_ready(out)

    ref = encoder_layer_ref(x, params, num_heads=H)
    assert out.shape == (B, L, D)
    # Tolerance loosened vs. the f32 reference: the kernel feeds the MXU bf16
    # inputs (f32 accumulation) and uses approx reciprocals on the EUP.
    assert jnp.allclose(out, ref, atol=8e-2, rtol=5e-2), (
        "mismatch vs reference; max abs err = %f"
        % float(jnp.max(jnp.abs(out - ref)))
    )

    print("KERNEL_OK")
</pallas_src>

<mosaic_0001>
module attributes {stable_mosaic.version = 11 : i64} {
  func.func @_encoder_layer_kernel(%arg0: i32, %arg1: i32, %arg2: memref<1x8x32xf32, #tpu.memory_space<vmem>>, %arg3: memref<1x8x32xf32, #tpu.memory_space<vmem>>, %arg4: memref<1x32xf32, #tpu.memory_space<vmem>>, %arg5: memref<1x32xf32, #tpu.memory_space<vmem>>, %arg6: memref<32x32xbf16, #tpu.memory_space<vmem>>, %arg7: memref<1x32xf32, #tpu.memory_space<vmem>>, %arg8: memref<32x32xbf16, #tpu.memory_space<vmem>>, %arg9: memref<1x32xf32, #tpu.memory_space<vmem>>, %arg10: memref<32x32xbf16, #tpu.memory_space<vmem>>, %arg11: memref<1x32xf32, #tpu.memory_space<vmem>>, %arg12: memref<32x32xbf16, #tpu.memory_space<vmem>>, %arg13: memref<1x32xf32, #tpu.memory_space<vmem>>, %arg14: memref<1x32xf32, #tpu.memory_space<vmem>>, %arg15: memref<1x32xf32, #tpu.memory_space<vmem>>, %arg16: memref<32x64xbf16, #tpu.memory_space<vmem>>, %arg17: memref<1x64xf32, #tpu.memory_space<vmem>>, %arg18: memref<64x32xbf16, #tpu.memory_space<vmem>>, %arg19: memref<1x32xf32, #tpu.memory_space<vmem>>, %arg20: memref<1x8x32xf32, #tpu.memory_space<vmem>>) attributes {dimension_semantics = [#tpu.dimension_semantics<parallel>, #tpu.dimension_semantics<parallel>], iteration_bounds = array<i64: 2, 1>, scalar_prefetch = 0 : i64, scratch_operands = 0 : i64, tpu.core_type = #tpu.core_type<tc>, window_params = [{transform_indices = @transform_0, window_bounds = array<i64: 1, 8, 32>}, {transform_indices = @transform_1, window_bounds = array<i64: 1, 8, 32>}, {pipeline_mode = #tpu.pipeline_mode<synchronous>, transform_indices = @transform_2, window_bounds = array<i64: 1, 32>}, {pipeline_mode = #tpu.pipeline_mode<synchronous>, transform_indices = @transform_3, window_bounds = array<i64: 1, 32>}, {pipeline_mode = #tpu.pipeline_mode<synchronous>, transform_indices = @transform_4, window_bounds = array<i64: 32, 32>}, {pipeline_mode = #tpu.pipeline_mode<synchronous>, transform_indices = @transform_5, window_bounds = array<i64: 1, 32>}, {pipeline_mode = #tpu.pipeline_mode<synchronous>, transform_indices = @transform_6, window_bounds = array<i64: 32, 32>}, {pipeline_mode = #tpu.pipeline_mode<synchronous>, transform_indices = @transform_7, window_bounds = array<i64: 1, 32>}, {pipeline_mode = #tpu.pipeline_mode<synchronous>, transform_indices = @transform_8, window_bounds = array<i64: 32, 32>}, {pipeline_mode = #tpu.pipeline_mode<synchronous>, transform_indices = @transform_9, window_bounds = array<i64: 1, 32>}, {pipeline_mode = #tpu.pipeline_mode<synchronous>, transform_indices = @transform_10, window_bounds = array<i64: 32, 32>}, {pipeline_mode = #tpu.pipeline_mode<synchronous>, transform_indices = @transform_11, window_bounds = array<i64: 1, 32>}, {pipeline_mode = #tpu.pipeline_mode<synchronous>, transform_indices = @transform_12, window_bounds = array<i64: 1, 32>}, {pipeline_mode = #tpu.pipeline_mode<synchronous>, transform_indices = @transform_13, window_bounds = array<i64: 1, 32>}, {pipeline_mode = #tpu.pipeline_mode<synchronous>, transform_indices = @transform_14, window_bounds = array<i64: 32, 64>}, {pipeline_mode = #tpu.pipeline_mode<synchronous>, transform_indices = @transform_15, window_bounds = array<i64: 1, 64>}, {pipeline_mode = #tpu.pipeline_mode<synchronous>, transform_indices = @transform_16, window_bounds = array<i64: 64, 32>}, {pipeline_mode = #tpu.pipeline_mode<synchronous>, transform_indices = @transform_17, window_bounds = array<i64: 1, 32>}, {transform_indices = @transform_18, window_bounds = array<i64: 1, 8, 32>}]} {
    %c0 = arith.constant 0 : index
    %c0_0 = arith.constant 0 : index
    %c0_1 = arith.constant 0 : index
    %0 = vector.load %arg2[%c0, %c0_0, %c0_1] : memref<1x8x32xf32, #tpu.memory_space<vmem>>, vector<1x8x32xf32>
    %1 = vector.shape_cast %0 : vector<1x8x32xf32> to vector<8x32xf32>
    %c0_2 = arith.constant 0 : index
    %c0_3 = arith.constant 0 : index
    %c0_4 = arith.constant 0 : index
    %2 = vector.load %arg3[%c0_2, %c0_3, %c0_4] : memref<1x8x32xf32, #tpu.memory_space<vmem>>, vector<1x8x32xf32>
    %3 = vector.shape_cast %2 : vector<1x8x32xf32> to vector<8x32xf32>
    %c0_5 = arith.constant 0 : index
    %c0_6 = arith.constant 0 : index
    %4 = vector.load %arg4[%c0_5, %c0_6] : memref<1x32xf32, #tpu.memory_space<vmem>>, vector<1x32xf32>
    %c0_7 = arith.constant 0 : index
    %c0_8 = arith.constant 0 : index
    %5 = vector.load %arg5[%c0_7, %c0_8] : memref<1x32xf32, #tpu.memory_space<vmem>>, vector<1x32xf32>
    %c0_9 = arith.constant 0 : index
    %c0_10 = arith.constant 0 : index
    %6 = vector.load %arg14[%c0_9, %c0_10] : memref<1x32xf32, #tpu.memory_space<vmem>>, vector<1x32xf32>
    %c0_11 = arith.constant 0 : index
    %c0_12 = arith.constant 0 : index
    %7 = vector.load %arg15[%c0_11, %c0_12] : memref<1x32xf32, #tpu.memory_space<vmem>>, vector<1x32xf32>
    %c0_13 = arith.constant 0 : index
    %c0_14 = arith.constant 0 : index
    %8 = vector.load %arg7[%c0_13, %c0_14] : memref<1x32xf32, #tpu.memory_space<vmem>>, vector<1x32xf32>
    %c0_15 = arith.constant 0 : index
    %c0_16 = arith.constant 0 : index
    %9 = vector.load %arg9[%c0_15, %c0_16] : memref<1x32xf32, #tpu.memory_space<vmem>>, vector<1x32xf32>
    %c0_17 = arith.constant 0 : index
    %c0_18 = arith.constant 0 : index
    %10 = vector.load %arg11[%c0_17, %c0_18] : memref<1x32xf32, #tpu.memory_space<vmem>>, vector<1x32xf32>
    %c0_19 = arith.constant 0 : index
    %c0_20 = arith.constant 0 : index
    %11 = vector.load %arg13[%c0_19, %c0_20] : memref<1x32xf32, #tpu.memory_space<vmem>>, vector<1x32xf32>
    %c0_21 = arith.constant 0 : index
    %c0_22 = arith.constant 0 : index
    %12 = vector.load %arg17[%c0_21, %c0_22] : memref<1x64xf32, #tpu.memory_space<vmem>>, vector<1x64xf32>
    %c0_23 = arith.constant 0 : index
    %c0_24 = arith.constant 0 : index
    %13 = vector.load %arg19[%c0_23, %c0_24] : memref<1x32xf32, #tpu.memory_space<vmem>>, vector<1x32xf32>
    %c0_25 = arith.constant 0 : index
    %c0_26 = arith.constant 0 : index
    %14 = vector.load %arg12[%c0_25, %c0_26] : memref<32x32xbf16, #tpu.memory_space<vmem>>, vector<32x32xbf16>
    %cst = arith.constant dense<0.000000e+00> : vector<8xf32>
    %15 = vector.multi_reduction <add>, %1, %cst [1] : vector<8x32xf32> to vector<8xf32>
    %16 = vector.shape_cast %15 : vector<8xf32> to vector<8x1xf32>
    %cst_27 = arith.constant 3.200000e+01 : f32
    %17 = vector.broadcast %cst_27 : f32 to vector<8x1xf32>
    %18 = arith.divf %16, %17 : vector<8x1xf32>
    %19 = vector.broadcast %18 : vector<8x1xf32> to vector<8x32xf32>
    %20 = arith.subf %1, %19 : vector<8x32xf32>
    %21 = arith.mulf %20, %20 : vector<8x32xf32>
    %cst_28 = arith.constant dense<0.000000e+00> : vector<8xf32>
    %22 = vector.multi_reduction <add>, %21, %cst_28 [1] : vector<8x32xf32> to vector<8xf32>
    %23 = vector.shape_cast %22 : vector<8xf32> to vector<8x1xf32>
    %cst_29 = arith.constant 3.100000e+01 : f32
    %24 = vector.broadcast %cst_29 : f32 to vector<8x1xf32>
    %25 = arith.divf %23, %24 : vector<8x1xf32>
    %26 = math.sqrt %25 : vector<8x1xf32>
    %cst_30 = arith.constant 9.99999997E-7 : f32
    %27 = vector.broadcast %cst_30 : f32 to vector<8x1xf32>
    %28 = arith.addf %26, %27 : vector<8x1xf32>
    %29 = tpu.reciprocal %28 {approx = true} : vector<8x1xf32> -> vector<8x1xf32>
    %30 = vector.broadcast %18 : vector<8x1xf32> to vector<8x32xf32>
    %31 = arith.subf %1, %30 : vector<8x32xf32>
    %32 = vector.broadcast %4 : vector<1x32xf32> to vector<8x32xf32>
    %33 = arith.mulf %32, %31 : vector<8x32xf32>
    %34 = vector.broadcast %29 : vector<8x1xf32> to vector<8x32xf32>
    %35 = arith.mulf %33, %34 : vector<8x32xf32>
    %36 = vector.broadcast %5 : vector<1x32xf32> to vector<8x32xf32>
    %37 = arith.addf %35, %36 : vector<8x32xf32>
    %38 = arith.truncf %37 : vector<8x32xf32> to vector<8x32xbf16>
    %cst_31 = arith.constant dense<0.000000e+00> : vector<8xf32>
    %39 = vector.multi_reduction <add>, %3, %cst_31 [1] : vector<8x32xf32> to vector<8xf32>
    %40 = vector.shape_cast %39 : vector<8xf32> to vector<8x1xf32>
    %cst_32 = arith.constant 3.200000e+01 : f32
    %41 = vector.broadcast %cst_32 : f32 to vector<8x1xf32>
    %42 = arith.divf %40, %41 : vector<8x1xf32>
    %43 = vector.broadcast %42 : vector<8x1xf32> to vector<8x32xf32>
    %44 = arith.subf %3, %43 : vector<8x32xf32>
    %45 = arith.mulf %44, %44 : vector<8x32xf32>
    %cst_33 = arith.constant dense<0.000000e+00> : vector<8xf32>
    %46 = vector.multi_reduction <add>, %45, %cst_33 [1] : vector<8x32xf32> to vector<8xf32>
    %47 = vector.shape_cast %46 : vector<8xf32> to vector<8x1xf32>
    %cst_34 = arith.constant 3.100000e+01 : f32
    %48 = vector.broadcast %cst_34 : f32 to vector<8x1xf32>
    %49 = arith.divf %47, %48 : vector<8x1xf32>
    %50 = math.sqrt %49 : vector<8x1xf32>
    %cst_35 = arith.constant 9.99999997E-7 : f32
    %51 = vector.broadcast %cst_35 : f32 to vector<8x1xf32>
    %52 = arith.addf %50, %51 : vector<8x1xf32>
    %53 = tpu.reciprocal %52 {approx = true} : vector<8x1xf32> -> vector<8x1xf32>
    %54 = vector.broadcast %42 : vector<8x1xf32> to vector<8x32xf32>
    %55 = arith.subf %3, %54 : vector<8x32xf32>
    %56 = vector.broadcast %4 : vector<1x32xf32> to vector<8x32xf32>
    %57 = arith.mulf %56, %55 : vector<8x32xf32>
    %58 = vector.broadcast %53 : vector<8x1xf32> to vector<8x32xf32>
    %59 = arith.mulf %57, %58 : vector<8x32xf32>
    %60 = vector.broadcast %5 : vector<1x32xf32> to vector<8x32xf32>
    %61 = arith.addf %59, %60 : vector<8x32xf32>
    %62 = arith.truncf %61 : vector<8x32xf32> to vector<8x32xbf16>
    %c0_36 = arith.constant 0 : index
    %c0_37 = arith.constant 0 : index
    %63 = vector.load %arg6[%c0_36, %c0_37] : memref<32x32xbf16, #tpu.memory_space<vmem>>, vector<32x32xbf16>
    %cst_38 = arith.constant dense<0.000000e+00> : vector<8x32xf32>
    %64 = tpu.matmul %38, %63, %cst_38 {dimension_numbers = #tpu.dot_dimension_numbers<[1], [0], [0], [1], [0, 0, 1, 1], [], []>} : vector<8x32xbf16>, vector<32x32xbf16>, vector<8x32xf32> -> vector<8x32xf32>
    %65 = vector.broadcast %8 : vector<1x32xf32> to vector<8x32xf32>
    %66 = arith.addf %64, %65 : vector<8x32xf32>
    %c0_39 = arith.constant 0 : index
    %c0_40 = arith.constant 0 : index
    %67 = vector.load %arg8[%c0_39, %c0_40] : memref<32x32xbf16, #tpu.memory_space<vmem>>, vector<32x32xbf16>
    %cst_41 = arith.constant dense<0.000000e+00> : vector<8x32xf32>
    %68 = tpu.matmul %62, %67, %cst_41 {dimension_numbers = #tpu.dot_dimension_numbers<[1], [0], [0], [1], [0, 0, 1, 1], [], []>} : vector<8x32xbf16>, vector<32x32xbf16>, vector<8x32xf32> -> vector<8x32xf32>
    %69 = vector.broadcast %9 : vector<1x32xf32> to vector<8x32xf32>
    %70 = arith.addf %68, %69 : vector<8x32xf32>
    %c0_42 = arith.constant 0 : index
    %c0_43 = arith.constant 0 : index
    %71 = vector.load %arg10[%c0_42, %c0_43] : memref<32x32xbf16, #tpu.memory_space<vmem>>, vector<32x32xbf16>
    %cst_44 = arith.constant dense<0.000000e+00> : vector<8x32xf32>
    %72 = tpu.matmul %62, %71, %cst_44 {dimension_numbers = #tpu.dot_dimension_numbers<[1], [0], [0], [1], [0, 0, 1, 1], [], []>} : vector<8x32xbf16>, vector<32x32xbf16>, vector<8x32xf32> -> vector<8x32xf32>
    %73 = vector.broadcast %10 : vector<1x32xf32> to vector<8x32xf32>
    %74 = arith.addf %72, %73 : vector<8x32xf32>
    %75 = arith.truncf %66 : vector<8x32xf32> to vector<8x32xbf16>
    %76 = arith.truncf %70 : vector<8x32xf32> to vector<8x32xbf16>
    %77 = arith.truncf %74 : vector<8x32xf32> to vector<8x32xbf16>
    %cst_45 = arith.constant 0.000000e+00 : f32
    %78 = vector.broadcast %cst_45 : f32 to vector<8x32xf32>
    %79 = vector.extract_strided_slice %75 {offsets = [0, 0], sizes = [8, 8], strides = [1, 1]} : vector<8x32xbf16> to vector<8x8xbf16>
    %80 = vector.extract_strided_slice %76 {offsets = [0, 0], sizes = [8, 8], strides = [1, 1]} : vector<8x32xbf16> to vector<8x8xbf16>
    %cst_46 = arith.constant dense<0.000000e+00> : vector<8x8xf32>
    %81 = tpu.matmul %79, %80, %cst_46 {dimension_numbers = #tpu.dot_dimension_numbers<[1], [1], [0], [0], [0, 0, 1, 0], [], []>} : vector<8x8xbf16>, vector<8x8xbf16>, vector<8x8xf32> -> vector<8x8xf32>
    %cst_47 = arith.constant 0.353553385 : f32
    %82 = vector.broadcast %cst_47 : f32 to vector<8x8xf32>
    %83 = arith.mulf %81, %82 : vector<8x8xf32>
    %cst_48 = arith.constant dense<0xFF800000> : vector<8xf32>
    %84 = vector.multi_reduction <maximumf>, %83, %cst_48 [1] : vector<8x8xf32> to vector<8xf32>
    %85 = vector.shape_cast %84 : vector<8xf32> to vector<8x1xf32>
    %86 = vector.broadcast %85 : vector<8x1xf32> to vector<8x8xf32>
    %87 = arith.subf %83, %86 : vector<8x8xf32>
    %88 = math.exp %87 : vector<8x8xf32>
    %cst_49 = arith.constant dense<0.000000e+00> : vector<8xf32>
    %89 = vector.multi_reduction <add>, %88, %cst_49 [1] : vector<8x8xf32> to vector<8xf32>
    %90 = vector.shape_cast %89 : vector<8xf32> to vector<8x1xf32>
    %91 = tpu.reciprocal %90 {approx = true} : vector<8x1xf32> -> vector<8x1xf32>
    %92 = vector.broadcast %91 : vector<8x1xf32> to vector<8x8xf32>
    %93 = arith.mulf %88, %92 : vector<8x8xf32>
    %94 = arith.truncf %93 : vector<8x8xf32> to vector<8x8xbf16>
    %95 = vector.extract_strided_slice %77 {offsets = [0, 0], sizes = [8, 8], strides = [1, 1]} : vector<8x32xbf16> to vector<8x8xbf16>
    %cst_50 = arith.constant dense<0.000000e+00> : vector<8x8xf32>
    %96 = tpu.matmul %94, %95, %cst_50 {dimension_numbers = #tpu.dot_dimension_numbers<[1], [0], [0], [1], [0, 0, 1, 1], [], []>} : vector<8x8xbf16>, vector<8x8xbf16>, vector<8x8xf32> -> vector<8x8xf32>
    %97 = arith.truncf %96 : vector<8x8xf32> to vector<8x8xbf16>
    %98 = vector.extract_strided_slice %14 {offsets = [0, 0], sizes = [8, 32], strides = [1, 1]} : vector<32x32xbf16> to vector<8x32xbf16>
    %cst_51 = arith.constant dense<0.000000e+00> : vector<8x32xf32>
    %99 = tpu.matmul %97, %98, %cst_51 {dimension_numbers = #tpu.dot_dimension_numbers<[1], [0], [0], [1], [0, 0, 1, 1], [], []>} : vector<8x8xbf16>, vector<8x32xbf16>, vector<8x32xf32> -> vector<8x32xf32>
    %100 = arith.addf %78, %99 : vector<8x32xf32>
    %101 = vector.extract_strided_slice %75 {offsets = [0, 8], sizes = [8, 8], strides = [1, 1]} : vector<8x32xbf16> to vector<8x8xbf16>
    %102 = vector.extract_strided_slice %76 {offsets = [0, 8], sizes = [8, 8], strides = [1, 1]} : vector<8x32xbf16> to vector<8x8xbf16>
    %cst_52 = arith.constant dense<0.000000e+00> : vector<8x8xf32>
    %103 = tpu.matmul %101, %102, %cst_52 {dimension_numbers = #tpu.dot_dimension_numbers<[1], [1], [0], [0], [0, 0, 1, 0], [], []>} : vector<8x8xbf16>, vector<8x8xbf16>, vector<8x8xf32> -> vector<8x8xf32>
    %cst_53 = arith.constant 0.353553385 : f32
    %104 = vector.broadcast %cst_53 : f32 to vector<8x8xf32>
    %105 = arith.mulf %103, %104 : vector<8x8xf32>
    %cst_54 = arith.constant dense<0xFF800000> : vector<8xf32>
    %106 = vector.multi_reduction <maximumf>, %105, %cst_54 [1] : vector<8x8xf32> to vector<8xf32>
    %107 = vector.shape_cast %106 : vector<8xf32> to vector<8x1xf32>
    %108 = vector.broadcast %107 : vector<8x1xf32> to vector<8x8xf32>
    %109 = arith.subf %105, %108 : vector<8x8xf32>
    %110 = math.exp %109 : vector<8x8xf32>
    %cst_55 = arith.constant dense<0.000000e+00> : vector<8xf32>
    %111 = vector.multi_reduction <add>, %110, %cst_55 [1] : vector<8x8xf32> to vector<8xf32>
    %112 = vector.shape_cast %111 : vector<8xf32> to vector<8x1xf32>
    %113 = tpu.reciprocal %112 {approx = true} : vector<8x1xf32> -> vector<8x1xf32>
    %114 = vector.broadcast %113 : vector<8x1xf32> to vector<8x8xf32>
    %115 = arith.mulf %110, %114 : vector<8x8xf32>
    %116 = arith.truncf %115 : vector<8x8xf32> to vector<8x8xbf16>
    %117 = vector.extract_strided_slice %77 {offsets = [0, 8], sizes = [8, 8], strides = [1, 1]} : vector<8x32xbf16> to vector<8x8xbf16>
    %cst_56 = arith.constant dense<0.000000e+00> : vector<8x8xf32>
    %118 = tpu.matmul %116, %117, %cst_56 {dimension_numbers = #tpu.dot_dimension_numbers<[1], [0], [0], [1], [0, 0, 1, 1], [], []>} : vector<8x8xbf16>, vector<8x8xbf16>, vector<8x8xf32> -> vector<8x8xf32>
    %119 = arith.truncf %118 : vector<8x8xf32> to vector<8x8xbf16>
    %120 = vector.extract_strided_slice %14 {offsets = [8, 0], sizes = [8, 32], strides = [1, 1]} : vector<32x32xbf16> to vector<8x32xbf16>
    %cst_57 = arith.constant dense<0.000000e+00> : vector<8x32xf32>
    %121 = tpu.matmul %119, %120, %cst_57 {dimension_numbers = #tpu.dot_dimension_numbers<[1], [0], [0], [1], [0, 0, 1, 1], [], []>} : vector<8x8xbf16>, vector<8x32xbf16>, vector<8x32xf32> -> vector<8x32xf32>
    %122 = arith.addf %100, %121 : vector<8x32xf32>
    %123 = vector.extract_strided_slice %75 {offsets = [0, 16], sizes = [8, 8], strides = [1, 1]} : vector<8x32xbf16> to vector<8x8xbf16>
    %124 = vector.extract_strided_slice %76 {offsets = [0, 16], sizes = [8, 8], strides = [1, 1]} : vector<8x32xbf16> to vector<8x8xbf16>
    %cst_58 = arith.constant dense<0.000000e+00> : vector<8x8xf32>
    %125 = tpu.matmul %123, %124, %cst_58 {dimension_numbers = #tpu.dot_dimension_numbers<[1], [1], [0], [0], [0, 0, 1, 0], [], []>} : vector<8x8xbf16>, vector<8x8xbf16>, vector<8x8xf32> -> vector<8x8xf32>
    %cst_59 = arith.constant 0.353553385 : f32
    %126 = vector.broadcast %cst_59 : f32 to vector<8x8xf32>
    %127 = arith.mulf %125, %126 : vector<8x8xf32>
    %cst_60 = arith.constant dense<0xFF800000> : vector<8xf32>
    %128 = vector.multi_reduction <maximumf>, %127, %cst_60 [1] : vector<8x8xf32> to vector<8xf32>
    %129 = vector.shape_cast %128 : vector<8xf32> to vector<8x1xf32>
    %130 = vector.broadcast %129 : vector<8x1xf32> to vector<8x8xf32>
    %131 = arith.subf %127, %130 : vector<8x8xf32>
    %132 = math.exp %131 : vector<8x8xf32>
    %cst_61 = arith.constant dense<0.000000e+00> : vector<8xf32>
    %133 = vector.multi_reduction <add>, %132, %cst_61 [1] : vector<8x8xf32> to vector<8xf32>
    %134 = vector.shape_cast %133 : vector<8xf32> to vector<8x1xf32>
    %135 = tpu.reciprocal %134 {approx = true} : vector<8x1xf32> -> vector<8x1xf32>
    %136 = vector.broadcast %135 : vector<8x1xf32> to vector<8x8xf32>
    %137 = arith.mulf %132, %136 : vector<8x8xf32>
    %138 = arith.truncf %137 : vector<8x8xf32> to vector<8x8xbf16>
    %139 = vector.extract_strided_slice %77 {offsets = [0, 16], sizes = [8, 8], strides = [1, 1]} : vector<8x32xbf16> to vector<8x8xbf16>
    %cst_62 = arith.constant dense<0.000000e+00> : vector<8x8xf32>
    %140 = tpu.matmul %138, %139, %cst_62 {dimension_numbers = #tpu.dot_dimension_numbers<[1], [0], [0], [1], [0, 0, 1, 1], [], []>} : vector<8x8xbf16>, vector<8x8xbf16>, vector<8x8xf32> -> vector<8x8xf32>
    %141 = arith.truncf %140 : vector<8x8xf32> to vector<8x8xbf16>
    %142 = vector.extract_strided_slice %14 {offsets = [16, 0], sizes = [8, 32], strides = [1, 1]} : vector<32x32xbf16> to vector<8x32xbf16>
    %cst_63 = arith.constant dense<0.000000e+00> : vector<8x32xf32>
    %143 = tpu.matmul %141, %142, %cst_63 {dimension_numbers = #tpu.dot_dimension_numbers<[1], [0], [0], [1], [0, 0, 1, 1], [], []>} : vector<8x8xbf16>, vector<8x32xbf16>, vector<8x32xf32> -> vector<8x32xf32>
    %144 = arith.addf %122, %143 : vector<8x32xf32>
    %145 = vector.extract_strided_slice %75 {offsets = [0, 24], sizes = [8, 8], strides = [1, 1]} : vector<8x32xbf16> to vector<8x8xbf16>
    %146 = vector.extract_strided_slice %76 {offsets = [0, 24], sizes = [8, 8], strides = [1, 1]} : vector<8x32xbf16> to vector<8x8xbf16>
    %cst_64 = arith.constant dense<0.000000e+00> : vector<8x8xf32>
    %147 = tpu.matmul %145, %146, %cst_64 {dimension_numbers = #tpu.dot_dimension_numbers<[1], [1], [0], [0], [0, 0, 1, 0], [], []>} : vector<8x8xbf16>, vector<8x8xbf16>, vector<8x8xf32> -> vector<8x8xf32>
    %cst_65 = arith.constant 0.353553385 : f32
    %148 = vector.broadcast %cst_65 : f32 to vector<8x8xf32>
    %149 = arith.mulf %147, %148 : vector<8x8xf32>
    %cst_66 = arith.constant dense<0xFF800000> : vector<8xf32>
    %150 = vector.multi_reduction <maximumf>, %149, %cst_66 [1] : vector<8x8xf32> to vector<8xf32>
    %151 = vector.shape_cast %150 : vector<8xf32> to vector<8x1xf32>
    %152 = vector.broadcast %151 : vector<8x1xf32> to vector<8x8xf32>
    %153 = arith.subf %149, %152 : vector<8x8xf32>
    %154 = math.exp %153 : vector<8x8xf32>
    %cst_67 = arith.constant dense<0.000000e+00> : vector<8xf32>
    %155 = vector.multi_reduction <add>, %154, %cst_67 [1] : vector<8x8xf32> to vector<8xf32>
    %156 = vector.shape_cast %155 : vector<8xf32> to vector<8x1xf32>
    %157 = tpu.reciprocal %156 {approx = true} : vector<8x1xf32> -> vector<8x1xf32>
    %158 = vector.broadcast %157 : vector<8x1xf32> to vector<8x8xf32>
    %159 = arith.mulf %154, %158 : vector<8x8xf32>
    %160 = arith.truncf %159 : vector<8x8xf32> to vector<8x8xbf16>
    %161 = vector.extract_strided_slice %77 {offsets = [0, 24], sizes = [8, 8], strides = [1, 1]} : vector<8x32xbf16> to vector<8x8xbf16>
    %cst_68 = arith.constant dense<0.000000e+00> : vector<8x8xf32>
    %162 = tpu.matmul %160, %161, %cst_68 {dimension_numbers = #tpu.dot_dimension_numbers<[1], [0], [0], [1], [0, 0, 1, 1], [], []>} : vector<8x8xbf16>, vector<8x8xbf16>, vector<8x8xf32> -> vector<8x8xf32>
    %163 = arith.truncf %162 : vector<8x8xf32> to vector<8x8xbf16>
    %164 = vector.extract_strided_slice %14 {offsets = [24, 0], sizes = [8, 32], strides = [1, 1]} : vector<32x32xbf16> to vector<8x32xbf16>
    %cst_69 = arith.constant dense<0.000000e+00> : vector<8x32xf32>
    %165 = tpu.matmul %163, %164, %cst_69 {dimension_numbers = #tpu.dot_dimension_numbers<[1], [0], [0], [1], [0, 0, 1, 1], [], []>} : vector<8x8xbf16>, vector<8x32xbf16>, vector<8x32xf32> -> vector<8x32xf32>
    %166 = arith.addf %144, %165 : vector<8x32xf32>
    %167 = arith.addf %1, %166 : vector<8x32xf32>
    %168 = vector.broadcast %11 : vector<1x32xf32> to vector<8x32xf32>
    %169 = arith.addf %167, %168 : vector<8x32xf32>
    %cst_70 = arith.constant dense<0.000000e+00> : vector<8xf32>
    %170 = vector.multi_reduction <add>, %169, %cst_70 [1] : vector<8x32xf32> to vector<8xf32>
    %171 = vector.shape_cast %170 : vector<8xf32> to vector<8x1xf32>
    %cst_71 = arith.constant 3.200000e+01 : f32
    %172 = vector.broadcast %cst_71 : f32 to vector<8x1xf32>
    %173 = arith.divf %171, %172 : vector<8x1xf32>
    %174 = vector.broadcast %173 : vector<8x1xf32> to vector<8x32xf32>
    %175 = arith.subf %169, %174 : vector<8x32xf32>
    %176 = arith.mulf %175, %175 : vector<8x32xf32>
    %cst_72 = arith.constant dense<0.000000e+00> : vector<8xf32>
    %177 = vector.multi_reduction <add>, %176, %cst_72 [1] : vector<8x32xf32> to vector<8xf32>
    %178 = vector.shape_cast %177 : vector<8xf32> to vector<8x1xf32>
    %cst_73 = arith.constant 3.100000e+01 : f32
    %179 = vector.broadcast %cst_73 : f32 to vector<8x1xf32>
    %180 = arith.divf %178, %179 : vector<8x1xf32>
    %181 = math.sqrt %180 : vector<8x1xf32>
    %cst_74 = arith.constant 9.99999997E-7 : f32
    %182 = vector.broadcast %cst_74 : f32 to vector<8x1xf32>
    %183 = arith.addf %181, %182 : vector<8x1xf32>
    %184 = tpu.reciprocal %183 {approx = true} : vector<8x1xf32> -> vector<8x1xf32>
    %185 = vector.broadcast %173 : vector<8x1xf32> to vector<8x32xf32>
    %186 = arith.subf %169, %185 : vector<8x32xf32>
    %187 = vector.broadcast %6 : vector<1x32xf32> to vector<8x32xf32>
    %188 = arith.mulf %187, %186 : vector<8x32xf32>
    %189 = vector.broadcast %184 : vector<8x1xf32> to vector<8x32xf32>
    %190 = arith.mulf %188, %189 : vector<8x32xf32>
    %191 = vector.broadcast %7 : vector<1x32xf32> to vector<8x32xf32>
    %192 = arith.addf %190, %191 : vector<8x32xf32>
    %193 = arith.truncf %192 : vector<8x32xf32> to vector<8x32xbf16>
    %c0_75 = arith.constant 0 : index
    %c0_76 = arith.constant 0 : index
    %194 = vector.load %arg16[%c0_75, %c0_76] : memref<32x64xbf16, #tpu.memory_space<vmem>>, vector<32x64xbf16>
    %cst_77 = arith.constant dense<0.000000e+00> : vector<8x64xf32>
    %195 = tpu.matmul %193, %194, %cst_77 {dimension_numbers = #tpu.dot_dimension_numbers<[1], [0], [0], [1], [0, 0, 1, 1], [], []>} : vector<8x32xbf16>, vector<32x64xbf16>, vector<8x64xf32> -> vector<8x64xf32>
    %196 = vector.broadcast %12 : vector<1x64xf32> to vector<8x64xf32>
    %197 = arith.addf %195, %196 : vector<8x64xf32>
    %cst_78 = arith.constant 0.000000e+00 : f32
    %198 = vector.broadcast %cst_78 : f32 to vector<8x64xf32>
    %199 = arith.maximumf %197, %198 : vector<8x64xf32>
    %200 = arith.truncf %199 : vector<8x64xf32> to vector<8x64xbf16>
    %c0_79 = arith.constant 0 : index
    %c0_80 = arith.constant 0 : index
    %201 = vector.load %arg18[%c0_79, %c0_80] : memref<64x32xbf16, #tpu.memory_space<vmem>>, vector<64x32xbf16>
    %cst_81 = arith.constant dense<0.000000e+00> : vector<8x32xf32>
    %202 = tpu.matmul %200, %201, %cst_81 {dimension_numbers = #tpu.dot_dimension_numbers<[1], [0], [0], [1], [0, 0, 1, 1], [], []>} : vector<8x64xbf16>, vector<64x32xbf16>, vector<8x32xf32> -> vector<8x32xf32>
    %203 = vector.broadcast %13 : vector<1x32xf32> to vector<8x32xf32>
    %204 = arith.addf %202, %203 : vector<8x32xf32>
    %205 = arith.addf %169, %204 : vector<8x32xf32>
    %c0_82 = arith.constant 0 : index
    %c0_83 = arith.constant 0 : index
    %c0_84 = arith.constant 0 : index
    %206 = vector.load %arg20[%c0_82, %c0_83, %c0_84] : memref<1x8x32xf32, #tpu.memory_space<vmem>>, vector<1x8x32xf32>
    %207 = vector.shape_cast %206 : vector<1x8x32xf32> to vector<8x32xf32>
    %208 = vector.shape_cast %205 : vector<8x32xf32> to vector<1x8x32xf32>
    tpu.vector_store %arg20[%c0_82, %c0_83, %c0_84], %208 {strides = array<i32>} : memref<1x8x32xf32, #tpu.memory_space<vmem>>, vector<1x8x32xf32>,
    return
  }
  func.func @transform_0(%arg0: i32, %arg1: i32) -> (i32, i32, i32) {
    %c0_i32 = arith.constant 0 : i32
    %c0_i32_0 = arith.constant 0 : i32
    return %arg0, %arg1, %c0_i32 : i32, i32, i32
  }
  func.func @transform_1(%arg0: i32, %arg1: i32) -> (i32, i32, i32) {
    %c0_i32 = arith.constant 0 : i32
    %c0_i32_0 = arith.constant 0 : i32
    %c0_i32_1 = arith.constant 0 : i32
    return %arg0, %c0_i32, %c0_i32_0 : i32, i32, i32
  }
  func.func @transform_2(%arg0: i32, %arg1: i32) -> (i32, i32) {
    %c0_i32 = arith.constant 0 : i32
    %c0_i32_0 = arith.constant 0 : i32
    %c0_i32_1 = arith.constant 0 : i32
    return %c0_i32, %c0_i32_0 : i32, i32
  }
  func.func @transform_3(%arg0: i32, %arg1: i32) -> (i32, i32) {
    %c0_i32 = arith.constant 0 : i32
    %c0_i32_0 = arith.constant 0 : i32
    %c0_i32_1 = arith.constant 0 : i32
    return %c0_i32, %c0_i32_0 : i32, i32
  }
  func.func @transform_4(%arg0: i32, %arg1: i32) -> (i32, i32) {
    %c0_i32 = arith.constant 0 : i32
    %c0_i32_0 = arith.constant 0 : i32
    %c0_i32_1 = arith.constant 0 : i32
    return %c0_i32, %c0_i32_0 : i32, i32
  }
  func.func @transform_5(%arg0: i32, %arg1: i32) -> (i32, i32) {
    %c0_i32 = arith.constant 0 : i32
    %c0_i32_0 = arith.constant 0 : i32
    %c0_i32_1 = arith.constant 0 : i32
    return %c0_i32, %c0_i32_0 : i32, i32
  }
  func.func @transform_6(%arg0: i32, %arg1: i32) -> (i32, i32) {
    %c0_i32 = arith.constant 0 : i32
    %c0_i32_0 = arith.constant 0 : i32
    %c0_i32_1 = arith.constant 0 : i32
    return %c0_i32, %c0_i32_0 : i32, i32
  }
  func.func @transform_7(%arg0: i32, %arg1: i32) -> (i32, i32) {
    %c0_i32 = arith.constant 0 : i32
    %c0_i32_0 = arith.constant 0 : i32
    %c0_i32_1 = arith.constant 0 : i32
    return %c0_i32, %c0_i32_0 : i32, i32
  }
  func.func @transform_8(%arg0: i32, %arg1: i32) -> (i32, i32) {
    %c0_i32 = arith.constant 0 : i32
    %c0_i32_0 = arith.constant 0 : i32
    %c0_i32_1 = arith.constant 0 : i32
    return %c0_i32, %c0_i32_0 : i32, i32
  }
  func.func @transform_9(%arg0: i32, %arg1: i32) -> (i32, i32) {
    %c0_i32 = arith.constant 0 : i32
    %c0_i32_0 = arith.constant 0 : i32
    %c0_i32_1 = arith.constant 0 : i32
    return %c0_i32, %c0_i32_0 : i32, i32
  }
  func.func @transform_10(%arg0: i32, %arg1: i32) -> (i32, i32) {
    %c0_i32 = arith.constant 0 : i32
    %c0_i32_0 = arith.constant 0 : i32
    %c0_i32_1 = arith.constant 0 : i32
    return %c0_i32, %c0_i32_0 : i32, i32
  }
  func.func @transform_11(%arg0: i32, %arg1: i32) -> (i32, i32) {
    %c0_i32 = arith.constant 0 : i32
    %c0_i32_0 = arith.constant 0 : i32
    %c0_i32_1 = arith.constant 0 : i32
    return %c0_i32, %c0_i32_0 : i32, i32
  }
  func.func @transform_12(%arg0: i32, %arg1: i32) -> (i32, i32) {
    %c0_i32 = arith.constant 0 : i32
    %c0_i32_0 = arith.constant 0 : i32
    %c0_i32_1 = arith.constant 0 : i32
    return %c0_i32, %c0_i32_0 : i32, i32
  }
  func.func @transform_13(%arg0: i32, %arg1: i32) -> (i32, i32) {
    %c0_i32 = arith.constant 0 : i32
    %c0_i32_0 = arith.constant 0 : i32
    %c0_i32_1 = arith.constant 0 : i32
    return %c0_i32, %c0_i32_0 : i32, i32
  }
  func.func @transform_14(%arg0: i32, %arg1: i32) -> (i32, i32) {
    %c0_i32 = arith.constant 0 : i32
    %c0_i32_0 = arith.constant 0 : i32
    %c0_i32_1 = arith.constant 0 : i32
    return %c0_i32, %c0_i32_0 : i32, i32
  }
  func.func @transform_15(%arg0: i32, %arg1: i32) -> (i32, i32) {
    %c0_i32 = arith.constant 0 : i32
    %c0_i32_0 = arith.constant 0 : i32
    %c0_i32_1 = arith.constant 0 : i32
    return %c0_i32, %c0_i32_0 : i32, i32
  }
  func.func @transform_16(%arg0: i32, %arg1: i32) -> (i32, i32) {
    %c0_i32 = arith.constant 0 : i32
    %c0_i32_0 = arith.constant 0 : i32
    %c0_i32_1 = arith.constant 0 : i32
    return %c0_i32, %c0_i32_0 : i32, i32
  }
  func.func @transform_17(%arg0: i32, %arg1: i32) -> (i32, i32) {
    %c0_i32 = arith.constant 0 : i32
    %c0_i32_0 = arith.constant 0 : i32
    %c0_i32_1 = arith.constant 0 : i32
    return %c0_i32, %c0_i32_0 : i32, i32
  }
  func.func @transform_18(%arg0: i32, %arg1: i32) -> (i32, i32, i32) {
    %c0_i32 = arith.constant 0 : i32
    %c0_i32_0 = arith.constant 0 : i32
    return %arg0, %arg1, %c0_i32 : i32, i32, i32
  }
}

</mosaic_0001>

<bundles_post_ra>
// kernel: tpu_custom_call.1
= control target key start
LH: loop header
LB: loop body
LE: loop exit
PB: predicated region body
PF: predicated region fallthrough
CT: control target
= control target key end

     0   :  { %s2317_s0 = inlined_call_operand.vmem [shape: f32[2,8,32], index: 0, kind: input, shape index: {}]   ;;  %s2318_s1 = inlined_call_operand.vmem [shape: f32[2,8,32], index: 1, kind: input, shape index: {}]   ;;  %s2319_s2 = inlined_call_operand.vmem [shape: f32[1,32], index: 2, kind: input, shape index: {}]   ;;  %s2320_s3 = inlined_call_operand.vmem [shape: f32[1,32], index: 3, kind: input, shape index: {}]   ;;  %s2321_s4 = inlined_call_operand.vmem [shape: bf16[32,32], index: 4, kind: input, shape index: {}]   ;;  %s2322_s5 = inlined_call_operand.vmem [shape: f32[1,32], index: 5, kind: input, shape index: {}]   ;;  %s2323_s6 = inlined_call_operand.hbm [shape: bf16[32,32], index: 6, kind: input, shape index: {}]   ;;  %s2324_s7 = inlined_call_operand.vmem [shape: f32[1,32], index: 7, kind: input, shape index: {}]   ;;  %s2325_s8 = inlined_call_operand.hbm [shape: bf16[32,32], index: 8, kind: input, shape index: {}]   ;;  %s2326_s9 = inlined_call_operand.vmem [shape: f32[1,32], index: 9, kind: input, shape index: {}]   ;;  %s2327_s10 = inlined_call_operand.hbm [shape: bf16[32,32], index: 10, kind: input, shape index: {}]   ;;  %s2328_s11 = inlined_call_operand.vmem [shape: f32[1,32], index: 11, kind: input, shape index: {}]   ;;  %s2329_s12 = inlined_call_operand.vmem [shape: f32[1,32], index: 12, kind: input, shape index: {}]   ;;  %s2330_s13 = inlined_call_operand.vmem [shape: f32[1,32], index: 13, kind: input, shape index: {}]   ;;  %s2331_s14 = inlined_call_operand.hbm [shape: bf16[32,64], index: 14, kind: input, shape index: {}]   ;;  %s2332_s15 = inlined_call_operand.vmem [shape: f32[1,64], index: 15, kind: input, shape index: {}]   ;;  %s2333_s16 = inlined_call_operand.vmem [shape: bf16[64,32], index: 16, kind: input, shape index: {}]   ;;  %s2334_s17 = inlined_call_operand.vmem [shape: f32[1,32], index: 17, kind: input, shape index: {}]   ;;  %s2335_s18 = inlined_call_operand.hbm [shape: f32[2,8,32], index: 18, kind: output, shape index: {}]  }
   0x1   :  { %2347 = sst [smem:[#allocation24_spill]] %s2317_s0 }
   0x2   :  { %2348 = sst [smem:[#allocation25_spill]] %s2318_s1 }
   0x3   :  { %2349 = sst [smem:[#allocation26_spill]] %s2319_s2 }
   0x4   :  { %2350 = sst [smem:[#allocation27_spill]] %s2325_s8 }
   0x5   :  { %2351 = sst [smem:[#allocation28_spill]] %s2332_s15 }
   0x6   :  { %2352 = sst [smem:[#allocation29_spill]] %s2334_s17 }
   0x7   :  { %2353 = sst [smem:[#allocation30_spill]] %s2335_s18 }
   0x8   :  { %23 = vsyncpa [#allocation3], 0 }
   0x9   :  { %24 = vsyncpa [#allocation6], 0 }
   0xa   :  { %25 = vsyncpa [#allocation9], 0 }
   0xb   :  { %26 = vsyncpa [#allocation4], 0 }
   0xc   :  { %28 = vsyncpa [#allocation4 + $0x1], 0  ;;  %s2025_s27 = smov 0   ;;  %s2027_s28 = smov 0  }
   0xd   :  { %s2029_s29 = smov 0   ;;  %s2031_s30 = smov 0  }
   0xe   :  { %s2033_s0 = smov 0   ;;  %s2035_s19 = smov 0  }
   0xf LB: > { %2354 = sst [smem:[#allocation15_spill]] %s1897_s27  ;;  %s1465_s1 = sadd.s32 4294967295, %s1917_s19   ;;  %s1917_s19 = sphi %s2035_s19, %s34_s19   ;;  %s1913_s0 = sphi %s2033_s0, %s2384_s0   ;;  %s1909_s30 = sphi %s2031_s30, %s2383_s30   ;;  %s1905_s29 = sphi %s2029_s29, %s2382_s29   ;;  %s1901_s28 = sphi %s2027_s28, %s2381_s28   ;;  %s1897_s27 = sphi %s2025_s27, %s2380_s27  }
  0x10   : > { %2355 = sst [smem:[#allocation16_spill]] %s1901_s28  ;;  %s1466_s20 = sadd.s32 4294967294, %s1917_s19  }
  0x11   : > { %2356 = sst [smem:[#allocation17_spill]] %s1905_s29  ;;  %s46_s21 = sadd.s32 1, %s1913_s0 }
  0x12   : > { %2357 = sst [smem:[#allocation18_spill]] %s1913_s0  ;;  %s445_s22 = sadd.s32 1, %s1905_s29 }
  0x13   : > { %2358 = sst [smem:[#allocation19_spill]] %s1917_s19  ;;  %p48_p0 = scmp.ge.s32.totalorder %s46_s21, 2 }
  0x14   : > { %p455_p1 = scmp.ne.s32.totalorder %s1905_s29, %s1901_s28  ;;  %p456_p2 = scmp.eq.s32.totalorder %s1465_s1, 1 }
  0x15   : > { %p461_p3 = scmp.ne.s32.totalorder %s1901_s28, %s1897_s27  ;;  %s2386_s21 = smov (%p48_p0, %s46_s21), 0 }
  0x16   : > { %2359 = sst [smem:[#allocation20_spill]] %s2386_s21  ;;  %p2065_p4 = por %p456_p2, %p455_p1 }
  0x17   : > { %p462_p5 = scmp.eq.s32.totalorder %s1466_s20, 1  ;;  %s440_s23 = ssub.s32 %s1913_s0, %s2386_s21 }
  0x18   : > { %s2360_s2 = scalar_select %p2065_p4, 1, 0 }
  0x19   : > { %p1467_p6 = scmp.ge.s32.totalorder %s1917_s19, 1  ;;  %p443_p7 = scmp.eq.s32.totalorder %s440_s23, 0 }
  0x1a   : > { %2361 = sst [smem:[#allocation21_spill]] %s2360_s2  ;;  %p2072_p8 = por %p462_p5, %p461_p3 }
  0x1b   : > { %p469_p9 = scmp.lt.s32.totalorder %s1917_s19, 3  ;;  %p2084_p11 = scmp.eq.s32.totalorder %s1465_s1, 0 }
  0x1c   : > { %s2362_s24 = scalar_select %p2072_p8, 1, 0 }
  0x1d   : > { %s2078_s25 = scalar_select %p443_p7, %s1905_s29, %s445_s22  }
  0x1e   : > { %2363 = sst [smem:[#allocation22_spill]] %s2362_s24  ;;  %p2080_p10 = pnand %p1467_p6, %p469_p9 }
  0x1f   : > { %2364 = sst [smem:[#allocation23_spill]] %s2078_s25  ;;  %s1919_s0 = smov [#allocation5]  }
  0x20   : > { %p1580_p12 = pneg %p2080_p10  ;;  %s2367_s8 = sld [smem:[#allocation27_spill]] }
  0x21   : > { %s511_s1 = sshll.u32 %s1919_s0, 4  ;;  %s1920_s25 = smov 64   ;;  %s512_s1 = int_to_ptr.vmem [resolvable:$true] %s511_s1 }
  0x22   : > { %p2095_p13 = pnand %p2084_p11, %p1580_p12  ;;  %s1921_s29 = smov 4  }
  0x23   : > { %s492_s20 = sshll.u32 %s2323_s6, 4  ;;  %s1922_s23 = smov [#allocation2]   ;;  %s493_s20 = int_to_ptr.hbm [resolvable:$true] %s492_s20 }
  0x24   : > { %s526_s17 = sshll.u32 %s2327_s10, 4  ;;  %s1923_s0 = smov [#allocation7]   ;;  %s527_s17 = int_to_ptr.hbm [resolvable:$true] %s526_s17 }
  0x25   : > { %s528_s15 = sshll.u32 %s1923_s0, 4  ;;  %s1924_s19 = smov [#allocation8]   ;;  %s529_s15 = int_to_ptr.vmem [resolvable:$true] %s528_s15 }
  0x26   : > { %s509_s21 = sshll.u32 %s2367_s8, 4  ;;  %s494_s8 = sshll.u32 %s1922_s23, 4  ;;  %s510_s21 = int_to_ptr.hbm [resolvable:$true] %s509_s21  ;;  %s495_s8 = int_to_ptr.vmem [resolvable:$true] %s494_s8 }
  0x27   : > { %1586 = dma.hbm_to_vmem [thread:$0]  (!%p2095_p13), %s510_s21, 256, %s512_s1, [#allocation6], %s1920_s25, %s1920_s25, %s1921_s29  }
  0x28   : > { %1583 = dma.hbm_to_vmem [thread:$0]  (!%p2095_p13), %s493_s20, 256, %s495_s8, [#allocation3], %s1920_s25, %s1920_s25, %s1921_s29  }
  0x29   : > { %s549_s1 = sshll.u32 %s2331_s14, 4  ;;  %s551_s24 = sshll.u32 %s1924_s19, 4  ;;  %s550_s1 = int_to_ptr.hbm [resolvable:$true] %s549_s1  ;;  %s552_s24 = int_to_ptr.vmem [resolvable:$true] %s551_s24 }
  0x2a   : > { %1589 = dma.hbm_to_vmem [thread:$0]  (!%p2095_p13), %s527_s17, 256, %s529_s15, [#allocation6], %s1920_s25, %s1920_s25, %s1921_s29  }
  0x2b   : > { %1592 = dma.hbm_to_vmem [thread:$0]  (!%p2095_p13), %s550_s1, 256, %s552_s24, [#allocation9], %s1920_s25, %s1920_s25, %s1921_s29  }
  0x2c   : > { %593 = sbr.rel (%p2080_p10) target bundleno = 2229 (0x8b5), region = 92 }
  0x31   : > { %1880 = dma.done.wait (%p2084_p11), [#allocation3], 256  }
  0x32   : > { %1882 = vsyncadd (%p2084_p11), [#allocation3], 4294967040 }
  0x33   : > { %1884 = dma.done.wait (%p2084_p11), [#allocation6], 512  }
  0x34   : > { %1886 = vsyncadd (%p2084_p11), [#allocation6], 4294966784 }
  0x35   : > { %1888 = dma.done.wait (%p2084_p11), [#allocation9], 256  }
  0x36   : > { %1890 = vsyncadd (%p2084_p11), [#allocation9], 4294967040  ;;  %p669_p0 = scmp.lt.s32.totalorder %s1909_s30, 1  ;;  %s2369_s28 = sld [smem:[#allocation25_spill]]  ;;  %vm697_vm0 = vcmask 261120   ;;  %v1925_v4 = vmov 32.0  }
  0x37   : > { %s2370_s26 = sld [smem:[#allocation24_spill]]  ;;  %1675 = vrcp.f32 %v1925_v4  ;;  %v1926_v21 = vmov 31.0   ;;  %v1553_v25 = vld [vmem:[#allocation2 + $0x8] sm:$0xff]  ;;  %v1555_v26 = vld [vmem:[#allocation5 + $0x8] sm:$0xff]  ;;  %v1552_v27 = vld [vmem:[#allocation2] sm:$0xff]  ;;  %vm879_vm7 = vcmask 64512  }
  0x38   : > { %s670_s8 = scalar_select %p669_p0, %s1909_s30, 1  ;;  %1677 = vrcp.f32 %v1926_v21  ;;  %837 = vmatpush.bf16.msra.mxu1 %v1553_v25  ;;  %869 = vmatpush.bf16.msra.mxu2 %v1555_v26  ;;  %v1554_v28 = vld [vmem:[#allocation5] sm:$0xff]  ;;  %v1551_v34 = vld [vmem:[%s2321_s4 + $0x8] sm:$0xff]  ;;  %v1550_v36 = vld [vmem:[%s2321_s4] sm:$0xff]  ;;  %vm915_vm8 = vcmask 1043456   ;;  %vm1305_vm11 = vcmask 523264  }
  0x39   : > { %802 = vmatpush.bf16.msra.mxu0 %v1551_v34  ;;  %s2371_s19 = sld [smem:[#allocation26_spill]]  ;;  %v1666_v60 = vld [vmem:[%s2320_s3] ss:$0 sm:$0xff]  ;;  %s1927_s25 = smov 120  }
  0x3a   : > { %s1479_s15 = sshll.u32 %s670_s8, 3  ;;  %s2372_s17 = sld [smem:[#allocation16_spill]] }
  0x3b   : > { %s1547_s23 = sshll.u32 %s1909_s30, 3  ;;  %s2374_s1 = sld [smem:[#allocation29_spill]] }
  0x3c   : > { %s679_s29 = scalar_lea.vmem %s2369_s28, %s1479_s15  ;;  %838 = vmatpush.bf16.msra.mxu1 %v1552_v27  ;;  %870 = vmatpush.bf16.msra.mxu2 %v1554_v28  ;;  %s2375_s8 = sld [smem:[#allocation30_spill]] }
  0x3d   : > { %v682_v0 = vld [vmem:[%s679_s29] sm:$0xff]  ;;  %s675_s22 = scalar_lea.vmem %s2370_s26, %s1479_s15  ;;  %v1676_v5 = vpop.eup %1675  ;;  %803 = vmatpush.bf16.msra.mxu0 %v1550_v36  ;;  %s1928_s26 = smov 112  }
  0x3e   : > { %v746_v1 = vsel %vm697_vm0, %v682_v0, 0.0  ;;  %v2139_v2 = vld [vmem:[%s675_s22] sm:$0xff]  ;;  %v702_v6 = vmul.f32 32.0, %v1676_v5  ;;  %vm706_vm1 = vweird.f32 %v1676_v5  ;;  %v1678_v22 = vpop.eup %1677  ;;  %s1929_s22 = smov 104  }
  0x3f   : > { %747 = vadd.xlane.f32.xlu0 %v746_v1  ;;  %v698_v3 = vsel %vm697_vm0, %v2139_v2, 0.0  ;;  %v715_v23 = vmul.f32 31.0, %v1678_v22  ;;  %vm719_vm2 = vweird.f32 %v1678_v22  ;;  %v1665_v55 = vld [vmem:[%s2371_s19] ss:$0 sm:$0xff] }
  0x40   : > { %v703_v7 = vsub.f32 1.0, %v702_v6  ;;  %s666_s27 = sand.u32 1, %s2372_s17  }
  0x41   : > { %v716_v24 = vsub.f32 1.0, %v715_v23  ;;  %s1478_s20 = sshll.u32 %s666_s27, 3  ;;  %s1325_s30 = scalar_lea.sflag [#allocation4], %s666_s27 }
  0x42   : > { %v704_v8 = vmul.f32 %v1676_v5, %v703_v7  ;;  %s1336_s18 = scalar_lea.hbm %s2375_s8, %s1547_s23  ;;  %s668_s28 = scalar_lea.vmem [#allocation10], %s1478_s20 }
  0x43   : > { %v717_v29 = vmul.f32 %v1678_v22, %v716_v24  ;;  %s1338_s29 = sshll.u32 %s668_s28, 4  ;;  %s1340_s2 = sshll.u32 %s1336_s18, 4  ;;  %s1339_s29 = int_to_ptr.vmem [resolvable:$true] %s1338_s29  ;;  %s1341_s2 = int_to_ptr.hbm [resolvable:$true] %s1340_s2 }
  0x44   : > { %v705_v9 = vadd.f32 %v1676_v5, %v704_v8  ;;  %s1841_s17 = sshra.s32 %s1341_s2, 4  ;;  %s1847_s20 = scalar_lea.hbm %s2375_s8, 16  ;;  %s1842_s17 = int_to_ptr.hbm [resolvable:$true] %s1841_s17 }
  0x45   : > { %v718_v30 = vadd.f32 %v1678_v22, %v717_v29  ;;  %p1848_p5 = scmp.lt.s32.totalorder %s1842_s17, %s2375_s8 }
  0x46   : > { %v2143_v10 = vsel %vm706_vm1, %v1676_v5, %v705_v9  ;;  %v1667_v9 = vld [vmem:[%s2324_s7] ss:$0 sm:$0xff] }
  0x47   : > { %699 = vadd.xlane.f32.xlu0 %v698_v3  ;;  %v2158_v31 = vsel %vm719_vm2, %v1678_v22, %v718_v30 }
  0xb2   : > { %v748_v11 = vpop.xlane.xlu0 %747 }
  0xb3   : > { %v749_v12 = vmul.f32 %v748_v11, %v2143_v10 }
  0xb5   : > { %v2146_v13 = vsub.f32 %v682_v0, %v749_v12 }
  0xb7   : > { %v751_v14 = vmul.f32 %v2146_v13, %v2146_v13  ;;  %v770_v59 = vmul.f32 %v1665_v55, %v2146_v13 }
  0xb9   : > { %v752_v15 = vsel %vm697_vm0, %v751_v14, 0.0  ;;  %v1668_v14 = vld [vmem:[%s2326_s9] ss:$0 sm:$0xff] }
  0xba   : > { %753 = vadd.xlane.f32.xlu1 %v752_v15  ;;  %v700_v16 = vpop.xlane.xlu0 %699 }
  0xbb   : > { %v708_v17 = vmul.f32 %v2143_v10, %v700_v16 }
  0xbd   : > { %v2153_v18 = vsub.f32 %v2139_v2, %v708_v17  ;;  %v1669_v17 = vld [vmem:[%s2322_s5] ss:$0 sm:$0xff] }
  0xbf   : > { %v710_v19 = vmul.f32 %v2153_v18, %v2153_v18  ;;  %v739_v4 = vmul.f32 %v1665_v55, %v2153_v18 }
  0xc1   : > { %v711_v20 = vsel %vm697_vm0, %v710_v19, 0.0 }
  0xc2   : > { %712 = vadd.xlane.f32.xlu1 %v711_v20 }
 0x12d   : > { %v754_v32 = vpop.xlane.xlu1 %753 }
 0x12e   : > { %v755_v33 = vmul.f32 %v754_v32, %v2158_v31 }
 0x130   : > { %1679 = vrsqrt.f32 %v755_v33  ;;  %vm763_vm3 = vcmp.eq.f32.partialorder %v755_v33, inf  ;;  %v766_v48 = vand.u32 2147483648, %v755_v33  ;;  %vm765_vm4 = vcmp.eq.f32.partialorder %v755_v33, 0.0 }
 0x135   : > { %v713_v35 = vpop.xlane.xlu1 %712 }
 0x136   : > { %v1680_v37 = vpop.eup %1679  ;;  %v721_v38 = vmul.f32 %v2158_v31, %v713_v35 }
 0x137   : > { %v757_v39 = vmul.f32 %v1680_v37, %v755_v33 }
 0x138   : > { %1681 = vrsqrt.f32 %v721_v38  ;;  %vm729_vm5 = vcmp.eq.f32.partialorder %v721_v38, inf  ;;  %v732_v57 = vand.u32 2147483648, %v721_v38  ;;  %vm731_vm6 = vcmp.eq.f32.partialorder %v721_v38, 0.0 }
 0x139   : > { %v758_v40 = vmul.f32 %v1680_v37, %v757_v39 }
 0x13b   : > { %v759_v41 = vmul.f32 0.5, %v758_v40 }
 0x13d   : > { %v760_v42 = vsub.f32 1.5, %v759_v41 }
 0x13e   : > { %v1682_v43 = vpop.eup %1681 }
 0x13f   : > { %v723_v44 = vmul.f32 %v1682_v43, %v721_v38  ;;  %v761_v45 = vmul.f32 %v1680_v37, %v760_v42 }
 0x141   : > { %v762_v46 = vmul.f32 %v761_v45, %v755_v33  ;;  %v724_v47 = vmul.f32 %v1682_v43, %v723_v44 }
 0x143   : > { %v764_v49 = vsel %vm763_vm3, %v755_v33, %v762_v46  ;;  %v725_v50 = vmul.f32 0.5, %v724_v47 }
 0x144   : > { %v767_v51 = vsel %vm765_vm4, %v766_v48, %v764_v49  ;;  %v693_v49 = vld [vmem:[#allocation7] sm:$0xf] }
 0x145   : > { %v768_v52 = vadd.f32 1e-06, %v767_v51  ;;  %v726_v53 = vsub.f32 1.5, %v725_v50  ;;  %v1023_v50 = vsel %vm915_vm8, %v693_v49, 0 }
 0x147   : > { %1683 = vrcp.f32 %v768_v52  ;;  %v727_v54 = vmul.f32 %v1682_v43, %v726_v53 }
 0x149   : > { %v728_v56 = vmul.f32 %v727_v54, %v721_v38 }
 0x14b   : > { %v730_v58 = vsel %vm729_vm5, %v721_v38, %v728_v56 }
 0x14c   : > { %v733_v61 = vsel %vm731_vm6, %v732_v57, %v730_v58 }
 0x14d   : > { %v1684_v62 = vpop.eup %1683  ;;  %v734_v63 = vadd.f32 1e-06, %v733_v61 }
 0x14e   : > { %v771_v0 = vmul.f32 %v1684_v62, %v770_v59 }
 0x14f   : > { %1685 = vrcp.f32 %v734_v63 }
 0x150   : > { %v772_v1 = vadd.f32 %v1666_v60, %v771_v0 }
 0x152   : > { %v773_v3 = vpack.c.bf16 %v772_v1, %v772_v1 }
 0x154   : > { %1498 = vmatmul.msk.bf16.vlgmr.msra.gmra.mxu1 %vm697_vm0, %v773_v3  ;;  %1507 = vmatmul.msk.bf16.vlgmr.msra.gmra.mxu2 %vm697_vm0, %v773_v3 }
 0x155   : > { %v1686_v5 = vpop.eup %1685 }
 0x156   : > { %v740_v6 = vmul.f32 %v1686_v5, %v739_v4 }
 0x158   : > { %v744_v7 = vadd.f32 %v1666_v60, %v740_v6 }
 0x15a   : > { %v745_v8 = vpack.c.bf16 %v744_v7, %v744_v7 }
 0x15c   : > { %1489 = vmatmul.msk.bf16.vlgmr.msra.gmra.mxu0 %vm697_vm0, %v745_v8 }
 0x1d1   : > { %v840_v11 = vpop.f32.mrf.mxu1 }
 0x1d2   : > { %v841_v12 = vadd.f32 %v1667_v9, %v840_v11 }
 0x1d4   : > { %v877_v13 = vpack.c.bf16 %v841_v12, %v841_v12 }
 0x1d6   : > { %v939_v15 = vunpack.c.l.b16 %v877_v13  ;;  %v884_v16 = vsel %vm879_vm7, %v877_v13, 0 }
 0x1d7   : > { %v872_v18 = vpop.f32.mrf.mxu2  ;;  %893 = vmatpush.bf16.xpose.msra.mxu3 %v884_v16 }
 0x1d8   : > { %v940_v19 = vpack.c.b16 %v939_v15, %v939_v15  ;;  %v873_v20 = vadd.f32 %v1668_v14, %v872_v18 }
 0x1d9   : > { %v805_v21 = vpop.f32.mrf.mxu0  ;;  %v842_v22 = vpop.f32.mrf.mxu1 }
 0x1da   : > { %v2189_v23 = vpack.c.bf16 %v873_v20, %v873_v20  ;;  %v806_v24 = vadd.f32 %v1669_v17, %v805_v21  ;;  %941 = vrot.lane.b32.xlu0 %v940_v19, %s1927_s25 }
 0x1dc   : > { %v876_v25 = vpack.c.bf16 %v806_v24, %v806_v24  ;;  %v917_v26 = vsel %vm915_vm8, %v2189_v23, 0  ;;  %v976_v62 = vunpack.c.l.b16 %v2189_v23 }
 0x1dd   : > { %926 = vmatpush.bf16.msrb.mxu0 %v917_v26 }
 0x1de   : > { %v934_v27 = vunpack.c.l.b16 %v876_v25  ;;  %1508 = vmatmul.msk.bf16.vlgmr.msra.gmra.mxu3 %vm879_vm7, %v876_v25  ;;  %v2210_v63 = vpack.c.b16 %v976_v62, %v976_v62 }
 0x1df   : > { %v874_v28 = vpop.f32.mrf.mxu2 }
 0x1e0   : > { %v935_v29 = vpack.c.b16 %v934_v27, %v934_v27 }
 0x1e1   : > { %v807_v30 = vpop.f32.mrf.mxu0  ;;  %1032 = vmatpush.bf16.msra.mxu0 %v1023_v50 }
 0x1e2   : > { %1038 = vrot.lane.b32.xlu0 %v935_v29, %s1928_s26  ;;  %936 = vrot.lane.b32.xlu1 %v935_v29, %s1927_s25 }
 0x1ea   : > { %1116 = vrot.lane.b32.xlu1 %v935_v29, %s1929_s22 }
 0x24c   : > { %v942_v32 = vpop.permute.xlu0 %941 }
 0x24d   : > { %v947_v33 = vsel %vm879_vm7, %v942_v32, 0  ;;  %v694_v32 = vld [vmem:[#allocation7 + $0x4] sm:$0xf] }
 0x24e   : > { %956 = vmatpush.bf16.xpose.msrb.mxu1 %v947_v33  ;;  %v1004_v33 = vsel %vm915_vm8, %v694_v32, 0 }
 0x24f   : > { %1013 = vmatpush.bf16.msrb.mxu3 %v1004_v33  ;;  %v1671_v33 = vld [vmem:[%s2329_s12] ss:$0 sm:$0xff] }
 0x254   : > { %v937_v34 = vpop.permute.xlu1 %936  ;;  %v1039_v48 = vpop.permute.xlu0 %1038 }
 0x255   : > { %1510 = vmatmul.msk.bf16.vlgmr.msrb.gmra.mxu1 %vm879_vm7, %v937_v34 }
 0x25c   : > { %v1117_v11 = vpop.permute.xlu1 %1116 }
 0x261   : > { %v895_v35 = vpop.f32.mrf.mxu3 }
 0x262   : > { %v899_v36 = vmul.f32 0.35355338, %v895_v35 }
 0x264   : > { %v900_v37 = vsel %vm879_vm7, %v899_v36, -inf }
 0x265   : > { %901 = vmax.xlane.f32.xlu2 %v900_v37 }
 0x269   : > { %v897_v38 = vpop.f32.mrf.mxu3 }
 0x2d2   : > { %v958_v39 = vpop.f32.mrf.mxu1 }
 0x2d3   : > { %v962_v40 = vmul.f32 0.35355338, %v958_v39 }
 0x2d5   : > { %v963_v41 = vsel %vm879_vm7, %v962_v40, -inf }
 0x2d6   : > { %964 = vmax.xlane.f32.xlu0 %v963_v41 }
 0x2d8   : > { %v902_v42 = vpop.xlane.xlu2 %901 }
 0x2d9   : > { %v903_v43 = vsub.f32 %v899_v36, %v902_v42 }
 0x2da   : > { %v960_v44 = vpop.f32.mrf.mxu1 }
 0x2db   : > { %v904_v45 = vmul.f32 1.442695, %v903_v43 }
 0x2dd   : > { %1687 = vpow2.f32 %v904_v45 }
 0x2e3   : > { %v1688_v46 = vpop.eup %1687 }
 0x2e4   : > { %v906_v47 = vsel %vm879_vm7, %v1688_v46, 0.0 }
 0x2e5   : > { %907 = vadd.xlane.f32.xlu2 %v906_v47 }
 0x2fd   : > { %1040 = vrot.lane.b32.xlu2 %v940_v19, %s1928_s26 }
 0x305   : > { %1118 = vrot.lane.b32.xlu2 %v940_v19, %s1929_s22 }
 0x349   : > { %v965_v51 = vpop.xlane.xlu0 %964 }
 0x34a   : > { %v966_v52 = vsub.f32 %v962_v40, %v965_v51 }
 0x34c   : > { %v967_v53 = vmul.f32 1.442695, %v966_v52 }
 0x34e   : > { %1689 = vpow2.f32 %v967_v53 }
 0x354   : > { %v1690_v54 = vpop.eup %1689 }
 0x355   : > { %v969_v55 = vsel %vm879_vm7, %v1690_v54, 0.0 }
 0x356   : > { %970 = vadd.xlane.f32.xlu0 %v969_v55 }
 0x358   : > { %v908_v56 = vpop.xlane.xlu2 %907 }
 0x359   : > { %1691 = vrcp.f32 %v908_v56 }
 0x35f   : > { %v1692_v57 = vpop.eup %1691 }
 0x360   : > { %v910_v58 = vmul.f32 %v1692_v57, %v1688_v46  ;;  %v1041_v59 = vpop.permute.xlu2 %1040  ;;  %v695_v46 = vld [vmem:[#allocation7 + $0x8] sm:$0xf] }
 0x361   : > { %v1046_v60 = vsel %vm879_vm7, %v1041_v59, 0  ;;  %v1100_v47 = vsel %vm915_vm8, %v695_v46, 0  ;;  %v696_v59 = vld [vmem:[#allocation7 + $0xc] sm:$0xf] }
 0x362   : > { %1055 = vmatpush.bf16.xpose.msra.mxu1 %v1046_v60  ;;  %v911_v61 = vpack.c.bf16 %v910_v58, %v910_v58  ;;  %1109 = vmatpush.bf16.msra.mxu3 %v1100_v47  ;;  %v1178_v60 = vsel %vm915_vm8, %v696_v59, 0 }
 0x364   : > { %1509 = vmatmul.msk.bf16.vlgmr.msrb.gmra.mxu0 %vm879_vm7, %v911_v61 }
 0x368   : > { %v1119_v0 = vpop.permute.xlu2 %1118 }
 0x369   : > { %v1124_v1 = vsel %vm879_vm7, %v1119_v0, 0  ;;  %1514 = vmatmul.msk.bf16.vlgmr.msra.gmra.mxu1 %vm879_vm7, %v1039_v48 }
 0x36a   : > { %1133 = vmatpush.bf16.xpose.msrb.mxu0 %v1124_v1  ;;  %1074 = vrot.lane.b32.xlu0 %v2210_v63, %s1928_s26 }
 0x3c9   : > { %v971_v12 = vpop.xlane.xlu0 %970 }
 0x3ca   : > { %1693 = vrcp.f32 %v971_v12 }
 0x3d0   : > { %v1694_v14 = vpop.eup %1693 }
 0x3d1   : > { %v973_v16 = vmul.f32 %v1694_v14, %v1690_v54 }
 0x3d3   : > { %v974_v21 = vpack.c.bf16 %v973_v16, %v973_v16 }
 0x3dc   : > { %v1075_v17 = vpop.permute.xlu0 %1074 }
 0x3dd   : > { %v1080_v20 = vsel %vm915_vm8, %v1075_v17, 0 }
 0x3e1   : > { %v928_v3 = vpop.f32.mrf.mxu0 }
 0x3e2   : > { %v932_v4 = vpack.c.bf16 %v928_v3, %v928_v3 }
 0x3e4   : > { %1513 = vmatmul.msk.bf16.vlgmr.msra.gmra.mxu0 %vm879_vm7, %v932_v4 }
 0x3e6   : > { %v1057_v5 = vpop.f32.mrf.mxu1 }
 0x3e7   : > { %v1061_v6 = vmul.f32 0.35355338, %v1057_v5 }
 0x3e9   : > { %v930_v7 = vpop.f32.mrf.mxu0  ;;  %v1062_v8 = vsel %vm879_vm7, %v1061_v6, -inf }
 0x3ea   : > { %1063 = vmax.xlane.f32.xlu2 %v1062_v8  ;;  %v1670_v7 = vld [vmem:[%s2328_s11] ss:$0 sm:$0xff] }
 0x3ee   : > { %v1059_v9 = vpop.f32.mrf.mxu1 }
 0x3f4   : > { %1517 = vmatmul.msk.bf16.vlgmr.msrb.gmra.mxu0 %vm879_vm7, %v1117_v11 }
 0x402   : > { %978 = vrot.lane.b32.xlu2 %v2210_v63, %s1927_s25  ;;  %s1843_s25 = scalar_lea.hbm %s1842_s17, 8 }
 0x403   : > { %p1844_p1 = scmp.ne.s32.totalorder %s1842_s17, %s1843_s25  ;;  %p1849_p6 = scmp.lt.s32.totalorder %s1847_s20, %s1843_s25 }
 0x405   : > { %p1845_p2 = pnand %p1844_p1, %p2065_p4  ;;  %p1850_p7 = por %p1849_p6, %p1848_p5 }
 0x407   : > { %p1846_p3 = pneg %p1845_p2 }
 0x409   : > { %p1851_p9 = pnand %p1850_p7, %p1846_p3 }
 0x45d   : > { %v1064_v13 = vpop.xlane.xlu2 %1063 }
 0x45e   : > { %v1065_v23 = vsub.f32 %v1061_v6, %v1064_v13 }
 0x460   : > { %v1066_v24 = vmul.f32 1.442695, %v1065_v23 }
 0x461   : > { %v2221_v15 = vpop.f32.mrf.mxu0 }
 0x462   : > { %1695 = vpow2.f32 %v1066_v24 }
 0x465   : > { %v979_v18 = vpop.permute.xlu2 %978 }
 0x466   : > { %v984_v19 = vsel %vm915_vm8, %v979_v18, 0  ;;  %v1557_v18 = vld [vmem:[#allocation8 + $0x8] sm:$0xff] }
 0x467   : > { %993 = vmatpush.bf16.msrb.mxu2 %v984_v19  ;;  %v1556_v19 = vld [vmem:[#allocation8] sm:$0xff] }
 0x468   : > { %v1696_v28 = vpop.eup %1695 }
 0x469   : > { %v1036_v22 = vpop.f32.mrf.mxu0  ;;  %v1068_v30 = vsel %vm879_vm7, %v1696_v28, 0.0 }
 0x46a   : > { %1511 = vmatmul.msk.bf16.vlgmr.msrb.gmra.mxu2 %vm879_vm7, %v974_v21  ;;  %v1561_v21 = vld [vmem:[%s2333_s16 + $0x18] sm:$0xff] }
 0x46b   : > { %1089 = vmatpush.bf16.msra.mxu2 %v1080_v20  ;;  %1313 = vmatpush.bf16.msra.mxu0 %v1561_v21 }
 0x46f   : > { %1187 = vmatpush.bf16.msrb.mxu2 %v1178_v60 }
 0x471   : > { %v1135_v25 = vpop.f32.mrf.mxu0 }
 0x472   : > { %v1139_v26 = vmul.f32 0.35355338, %v1135_v25 }
 0x474   : > { %v1140_v27 = vsel %vm879_vm7, %v1139_v26, -inf }
 0x475   : > { %1141 = vmax.xlane.f32.xlu1 %v1140_v27 }
 0x479   : > { %v1137_v29 = vpop.f32.mrf.mxu0 }
 0x47d   : > { %1069 = vadd.xlane.f32.xlu1 %v1068_v30 }
 0x4e8   : > { %v1142_v34 = vpop.xlane.xlu1 %1141 }
 0x4e9   : > { %v1143_v35 = vsub.f32 %v1139_v26, %v1142_v34 }
 0x4eb   : > { %v1144_v36 = vmul.f32 1.442695, %v1143_v35  ;;  %v1672_v35 = vld [vmem:[%s2330_s13] ss:$0 sm:$0xff] }
 0x4ed   : > { %1697 = vpow2.f32 %v1144_v36  ;;  %v995_v37 = vpop.f32.mrf.mxu2 }
 0x4ee   : > { %v999_v38 = vpack.c.bf16 %v995_v37, %v995_v37 }
 0x4f0   : > { %v1070_v39 = vpop.xlane.xlu1 %1069  ;;  %1512 = vmatmul.msk.bf16.vlgmr.msrb.gmra.mxu3 %vm879_vm7, %v999_v38 }
 0x4f1   : > { %1699 = vrcp.f32 %v1070_v39  ;;  %1261 = vmatpush.bf16.msrb.mxu3 %v1557_v18 }
 0x4f3   : > { %v1698_v40 = vpop.eup %1697 }
 0x4f4   : > { %v1146_v41 = vsel %vm879_vm7, %v1698_v40, 0.0 }
 0x4f5   : > { %1147 = vadd.xlane.f32.xlu1 %v1146_v41  ;;  %v997_v42 = vpop.f32.mrf.mxu2  ;;  %1262 = vmatpush.bf16.msrb.mxu3 %v1556_v19  ;;  %v1558_v41 = vld [vmem:[%s2333_s16] sm:$0xff] }
 0x4f7   : > { %v1700_v43 = vpop.eup %1699 }
 0x4f8   : > { %v1072_v44 = vmul.f32 %v1700_v43, %v1696_v28 }
 0x4fa   : > { %v1073_v45 = vpack.c.bf16 %v1072_v44, %v1072_v44 }
 0x4fc   : > { %1515 = vmatmul.msk.bf16.vlgmr.msra.gmra.mxu2 %vm879_vm7, %v1073_v45 }
 0x50e   : > { %1152 = vrot.lane.b32.xlu1 %v2210_v63, %s1929_s22  ;;  %s2373_s22 = sld [smem:[#allocation28_spill]] }
 0x514   : > { %v1673_v42 = vld [vmem:[%s2373_s22] ss:$0 sm:$0xff] }
 0x568   : > { %v1148_v48 = vpop.xlane.xlu1 %1147 }
 0x569   : > { %1701 = vrcp.f32 %v1148_v48  ;;  %v1674_v48 = vld [vmem:[%s2374_s1] ss:$0 sm:$0xff] }
 0x56f   : > { %v1702_v51 = vpop.eup %1701 }
 0x570   : > { %v1150_v52 = vmul.f32 %v1702_v51, %v1698_v40  ;;  %v1559_v40 = vld [vmem:[%s2333_s16 + $0x8] sm:$0xff] }
 0x572   : > { %v1151_v57 = vpack.c.bf16 %v1150_v52, %v1150_v52 }
 0x573   : > { %v1015_v49 = vpop.f32.mrf.mxu3 }
 0x574   : > { %v1035_v63 = vadd.f32 %v2221_v15, %v1015_v49 }
 0x57b   : > { %v1017_v50 = vpop.f32.mrf.mxu3 }
 0x57f   : > { %v1091_v53 = vpop.f32.mrf.mxu2 }
 0x580   : > { %v1095_v54 = vpack.c.bf16 %v1091_v53, %v1091_v53  ;;  %v1153_v55 = vpop.permute.xlu1 %1152 }
 0x581   : > { %v1158_v56 = vsel %vm915_vm8, %v1153_v55, 0 }
 0x582   : > { %1516 = vmatmul.msk.bf16.vlgmr.msra.gmra.mxu3 %vm879_vm7, %v1095_v54  ;;  %1167 = vmatpush.bf16.msrb.mxu1 %v1158_v56 }
 0x585   : > { %1518 = vmatmul.msk.bf16.vlgmr.msrb.gmra.mxu1 %vm879_vm7, %v1151_v57 }
 0x587   : > { %v1093_v58 = vpop.f32.mrf.mxu2 }
 0x602   : > { %v1169_v61 = vpop.f32.mrf.mxu1 }
 0x603   : > { %v1173_v62 = vpack.c.bf16 %v1169_v61, %v1169_v61 }
 0x605   : > { %v1111_v0 = vpop.f32.mrf.mxu3  ;;  %1519 = vmatmul.msk.bf16.vlgmr.msrb.gmra.mxu2 %vm879_vm7, %v1173_v62 }
 0x606   : > { %v1115_v1 = vadd.f32 %v1111_v0, %v1035_v63 }
 0x60a   : > { %v1171_v3 = vpop.f32.mrf.mxu1 }
 0x60d   : > { %v1113_v4 = vpop.f32.mrf.mxu3 }
 0x688   : > { %v1189_v5 = vpop.f32.mrf.mxu2 }
 0x689   : > { %v1193_v6 = vadd.f32 %v1189_v5, %v1115_v1 }
 0x68b   : > { %v1194_v8 = vadd.f32 %v1193_v6, %v2139_v2 }
 0x68d   : > { %v2245_v9 = vadd.f32 %v1670_v7, %v1194_v8 }
 0x68f   : > { %v1199_v11 = vsel %vm697_vm0, %v2245_v9, 0.0 }
 0x690   : > { %1200 = vadd.xlane.f32.xlu2 %v1199_v11  ;;  %v1191_v12 = vpop.f32.mrf.mxu2 }
 0x703   : > { %v1201_v13 = vpop.xlane.xlu2 %1200 }
 0x704   : > { %v1202_v14 = vmul.f32 %v1201_v13, %v2143_v10  ;;  %v1560_v10 = vld [vmem:[%s2333_s16 + $0x10] sm:$0xff] }
 0x705   : > { %1314 = vmatpush.bf16.msra.mxu0 %v1560_v10 }
 0x706   : > { %v1203_v15 = vsub.f32 %v2245_v9, %v1202_v14 }
 0x708   : > { %v1204_v16 = vmul.f32 %v1203_v15, %v1203_v15  ;;  %v1226_v34 = vmul.f32 %v1671_v33, %v1203_v15 }
 0x709   : > { %1315 = vmatpush.bf16.msra.mxu0 %v1559_v40 }
 0x70a   : > { %v1205_v17 = vsel %vm697_vm0, %v1204_v16, 0.0 }
 0x70b   : > { %1206 = vadd.xlane.f32.xlu0 %v1205_v17 }
 0x70d   : > { %1316 = vmatpush.bf16.msra.mxu0 %v1558_v41 }
 0x77e   : > { %v1207_v2 = vpop.xlane.xlu0 %1206 }
 0x77f   : > { %v1208_v20 = vmul.f32 %v1207_v2, %v2158_v31 }
 0x781   : > { %1703 = vrsqrt.f32 %v1208_v20  ;;  %vm1216_vm9 = vcmp.eq.f32.partialorder %v1208_v20, inf  ;;  %v1219_v31 = vand.u32 2147483648, %v1208_v20  ;;  %vm1218_vm10 = vcmp.eq.f32.partialorder %v1208_v20, 0.0 }
 0x787   : > { %v1704_v22 = vpop.eup %1703 }
 0x788   : > { %v1210_v23 = vmul.f32 %v1704_v22, %v1208_v20 }
 0x78a   : > { %v1211_v24 = vmul.f32 %v1704_v22, %v1210_v23 }
 0x78c   : > { %v1212_v25 = vmul.f32 0.5, %v1211_v24 }
 0x78e   : > { %v1213_v26 = vsub.f32 1.5, %v1212_v25 }
 0x790   : > { %v1214_v27 = vmul.f32 %v1704_v22, %v1213_v26 }
 0x792   : > { %v1215_v28 = vmul.f32 %v1214_v27, %v1208_v20 }
 0x794   : > { %v1217_v29 = vsel %vm1216_vm9, %v1208_v20, %v1215_v28 }
 0x795   : > { %v1220_v30 = vsel %vm1218_vm10, %v1219_v31, %v1217_v29 }
 0x796   : > { %v1221_v32 = vadd.f32 1e-06, %v1220_v30 }
 0x798   : > { %1705 = vrcp.f32 %v1221_v32 }
 0x79e   : > { %v1706_v36 = vpop.eup %1705 }
 0x79f   : > { %v1227_v37 = vmul.f32 %v1706_v36, %v1226_v34 }
 0x7a1   : > { %v1231_v38 = vadd.f32 %v1672_v35, %v1227_v37 }
 0x7a3   : > { %v1232_v39 = vpack.c.bf16 %v1231_v38, %v1231_v38 }
 0x7a5   : > { %1528 = vmatmul.msk.bf16.vlgmr.msrb.gmra.mxu3 %vm697_vm0, %v1232_v39 }
 0x828   : > { %v1264_v43 = vpop.f32.mrf.mxu3 }
 0x829   : > { %v1265_v44 = vadd.f32 %v1673_v42, %v1264_v43 }
 0x82b   : > { %v1268_v45 = vmax.f32 %v1265_v44, 0.0 }
 0x82d   : > { %v1269_v46 = vpack.c.bf16 %v1268_v45, %v1268_v45 }
 0x82f   : > { %1545 = vmatmul.msk.bf16.vlgmr.msra.gmra.mxu0 %vm1305_vm11, %v1269_v46 }
 0x830   : > { %v1266_v47 = vpop.f32.mrf.mxu3 }
 0x8ac   : > { %v1318_v49 = vpop.f32.mrf.mxu0 }
 0x8ad   : > { %v1319_v50 = vadd.f32 %v1674_v48, %v1318_v49 }
 0x8af   : > { %v1322_v51 = vadd.f32 %v1319_v50, %v2245_v9 }
 0x8b1   : > { %1323 = vst.msk [vmem:[%s668_s28] sm:$0xff] %vm697_vm0, %v1322_v51 }
 0x8b2   : > { %1854 = shalt.err (!%p1851_p9)
}
 0x8b3   : > { %1578 = dma.vmem_to_hbm [thread:$0]  (%p2065_p4), %s1339_s29, 128, %s1341_s2, %s1325_s30  }
 0x8b4   : > { %v1320_v52 = vpop.f32.mrf.mxu0 }
 0x8b5 PF: > { %s2377_s27 = sld [smem:[#allocation19_spill]] }
 0x8b6   : > { %s2378_s21 = sld [smem:[#allocation15_spill]] }
 0x8bb   : > { %p1605_p10 = scmp.ge.s32.totalorder %s2377_s27, 2 }
 0x8bc   : > { %s1352_s19 = sand.u32 1, %s2378_s21  }
 0x8bd   : > { %p1594_p11 = pnand %p1605_p10, %p2072_p8  ;;  %s1353_s24 = scalar_lea.sflag [#allocation4], %s1352_s19 }
 0x8bf   : > { %p1595_p12 = pneg %p1594_p11 }
 0x8c1   : > { %1892 = dma.done.wait (%p1595_p12), %s1353_s24, 128  }
 0x8c2   : > { %1894 = vsyncadd (%p1595_p12), %s1353_s24, 4294967168  ;;  %s34_s19 = sadd.s32 1, %s2377_s27   ;;  %s2380_s27 = sld [smem:[#allocation16_spill]] }
 0x8c3   : > { %p31_p13 = scmp.ge.s32.totalorder %s34_s19, 4   ;;  %s2381_s28 = sld [smem:[#allocation17_spill]] }
 0x8c4   : > { %s2382_s29 = sld [smem:[#allocation23_spill]] }
 0x8c5   : > { %s2383_s30 = sld [smem:[#allocation18_spill]]  ;;  %33 = sbr.rel (!%p31_p13) target bundleno = 15 (0xf), region = 147 }
 0x8c6   : > { %s2384_s0 = sld [smem:[#allocation20_spill]] }
 0x8ca   :  { %1359 = vsyncpa [#allocation3], 1 }
 0x8cb   :  { %1361 = vsyncpa [#allocation3 + $0x1], 1 }
 0x8cc   :  { %1362 = vsyncpa [#allocation6], 1 }
 0x8cd   :  { %1363 = vsyncpa [#allocation9], 1 }
 0x8ce   :  { %1364 = vsyncpa [#allocation4], 1 }
 0x8cf   :  { %1366 = vsyncpa [#allocation4 + $0x1], 1 }

</bundles_post_ra>
